<compile_context>
chip_gen: v5e
topology: v5e:2x2
jax: 0.10.0
libtpu: 0.0.40
codegen_flags: <defaults>
</compile_context>

<pallas_src>
import jax
import jax.numpy as jnp
from jax.experimental import pallas as pl
from jax.experimental.pallas import tpu as pltpu


def rnn_fc_kernel(x_ref, w0_ref, b0_ref, w1_ref, b1_ref, wfc_ref, bfc_ref,
                  out_ref, cat0_ref, cat1_ref, hseq_ref):
    # x_ref: (T, B, D_in) time-major.  w0: (D_in+H, H), w1: (2H, H),
    # wfc: (T*H, C_pad).  cat0: (B, D_in+H), cat1: (B, 2H), hseq: (B, T*H).
    T, B, D_in = x_ref.shape
    H = b0_ref.shape[1]

    # Hoisted bias broadcasts (JAX does not CSE broadcast_in_dim in the unroll).
    b0 = jnp.broadcast_to(b0_ref[...], (B, H))
    b1 = jnp.broadcast_to(b1_ref[...], (B, H))

    # h0 = h1 = 0 initial hidden state, stored in the recurrent half of the
    # staging buffers.
    cat0_ref[:, D_in:] = jnp.zeros((B, H), jnp.float32)
    cat1_ref[:, H:] = jnp.zeros((B, H), jnp.float32)

    # T is small & static -> unrolled Python loop (traced once).
    for t in range(T):
        # ---- layer 0: one fused dot over [x_t | h0_prev] @ [Wih0^T; Whh0^T]
        cat0_ref[:, :D_in] = x_ref[t]
        h0 = jnp.tanh(
            jnp.dot(cat0_ref[...], w0_ref[...],
                    preferred_element_type=jnp.float32) + b0)

        # ---- layer 1: one fused dot over [h0_t | h1_prev] @ [Wih1^T; Whh1^T]
        cat1_ref[:, :H] = h0
        h1 = jnp.tanh(
            jnp.dot(cat1_ref[...], w1_ref[...],
                    preferred_element_type=jnp.float32) + b1)

        # carry states for the next timestep
        cat0_ref[:, D_in:] = h0
        cat1_ref[:, H:] = h1

        # stage h1_t for the single end-of-loop FC matmul
        hseq_ref[:, t * H:(t + 1) * H] = h1

    # One K = T*H matmul for the classifier head, lane-dense (C padded to 128).
    out_ref[...] = (
        jnp.dot(hseq_ref[...], wfc_ref[...],
                preferred_element_type=jnp.float32) + bfc_ref[...])


def pack_params(torch_params, c_pad=128):
    """Pack PyTorch-layout weights into the kernel layout (transposed,
    K-concatenated, bias-summed, FC padded to a lane-dense class dim)."""
    (w_ih0, w_hh0, b_ih0, b_hh0,
     w_ih1, w_hh1, b_ih1, b_hh1, w_fc, b_fc) = torch_params
    H = w_hh0.shape[0]
    C, TH = w_fc.shape
    c_pad = max(c_pad, C)

    w0 = jnp.concatenate([w_ih0.T, w_hh0.T], axis=0)          # (D_in+H, H)
    w1 = jnp.concatenate([w_ih1.T, w_hh1.T], axis=0)          # (2H, H)
    b0 = (b_ih0 + b_hh0).reshape(1, H)
    b1 = (b_ih1 + b_hh1).reshape(1, H)
    wfc = jnp.zeros((TH, c_pad), jnp.float32).at[:, :C].set(w_fc.T)
    bfc = jnp.zeros((1, c_pad), jnp.float32).at[:, :C].set(b_fc)
    return (w0, b0, w1, b1, wfc, bfc)


def rnn_forward(x, packed, num_classes):
    (w0, b0, w1, b1, wfc, bfc) = packed
    B, T, D_in = x.shape
    H = b0.shape[1]
    C_pad = wfc.shape[1]

    # Pad batch to a full f32 sublane group (multiple of 8) -> dense (8,128)
    # output tile; pad rows are computed on zeros and sliced off below.
    Bp = ((B + 7) // 8) * 8
    x_tm = jnp.transpose(x, (1, 0, 2))                        # time-major (T, B, D_in)
    if Bp != B:
        x_tm = jnp.pad(x_tm, ((0, 0), (0, Bp - B), (0, 0)))

    vmem = pl.BlockSpec(memory_space=pltpu.MemorySpace.VMEM)
    out = pl.pallas_call(
        rnn_fc_kernel,
        out_shape=jax.ShapeDtypeStruct((Bp, C_pad), jnp.float32),
        in_specs=[vmem] * 7,
        out_specs=vmem,
        scratch_shapes=[
            pltpu.VMEM((Bp, D_in + H), jnp.float32),   # [x_t | h0_prev] staging
            pltpu.VMEM((Bp, 2 * H), jnp.float32),      # [h0_t | h1_prev] staging
            pltpu.VMEM((Bp, T * H), jnp.float32),      # all h1_t for the FC
        ],
    )(x_tm, w0, b0, w1, b1, wfc, bfc)
    return out[:B, :num_classes]


def rnn_reference(x, torch_params):
    """Pure-JAX reference with PyTorch nn.RNN(batch_first=True)+Linear semantics."""
    (w_ih0, w_hh0, b_ih0, b_hh0,
     w_ih1, w_hh1, b_ih1, b_hh1, w_fc, b_fc) = torch_params
    B, T, _ = x.shape
    H = w_hh0.shape[0]
    h0 = jnp.zeros((B, H), jnp.float32)
    h1 = jnp.zeros((B, H), jnp.float32)
    outs = []
    for t in range(T):
        h0 = jnp.tanh(x[:, t, :] @ w_ih0.T + h0 @ w_hh0.T + b_ih0 + b_hh0)
        h1 = jnp.tanh(h0 @ w_ih1.T + h1 @ w_hh1.T + b_ih1 + b_hh1)
        outs.append(h1)
    out = jnp.stack(outs, axis=1).reshape(B, T * H)
    return out @ w_fc.T + b_fc


def init_params(key, input_size, hidden_size, seq_len, num_classes):
    """PyTorch-layout params with uniform(-1/sqrt(fan_in), 1/sqrt(fan_in)) init."""
    ks = jax.random.split(key, 10)
    bound = 1.0 / jnp.sqrt(jnp.float32(hidden_size))

    def u(k, shape, b):
        return jax.random.uniform(k, shape, jnp.float32, -b, b)

    w_ih0 = u(ks[0], (hidden_size, input_size), bound)
    w_hh0 = u(ks[1], (hidden_size, hidden_size), bound)
    b_ih0 = u(ks[2], (hidden_size,), bound)
    b_hh0 = u(ks[3], (hidden_size,), bound)
    w_ih1 = u(ks[4], (hidden_size, hidden_size), bound)
    w_hh1 = u(ks[5], (hidden_size, hidden_size), bound)
    b_ih1 = u(ks[6], (hidden_size,), bound)
    b_hh1 = u(ks[7], (hidden_size,), bound)
    fc_bound = 1.0 / jnp.sqrt(jnp.float32(hidden_size * seq_len))
    w_fc = u(ks[8], (num_classes, hidden_size * seq_len), fc_bound)
    b_fc = u(ks[9], (num_classes,), fc_bound)
    return (w_ih0, w_hh0, b_ih0, b_hh0,
            w_ih1, w_hh1, b_ih1, b_hh1, w_fc, b_fc)


if __name__ == "__main__":
    # Small shapes consistent with the module's forward pass.
    batch = 2
    seq_len = 8
    input_size = 16
    hidden_size = 32
    num_classes = 10

    key = jax.random.PRNGKey(0)
    kx, kp = jax.random.split(key)
    x = jax.random.normal(kx, (batch, seq_len, input_size), jnp.float32)
    torch_params = init_params(kp, input_size, hidden_size, seq_len, num_classes)
    packed = pack_params(torch_params)

    out = rnn_forward(x, packed, num_classes)
    out = jax.block_until_ready(out)

    ref = rnn_reference(x, torch_params)
    assert out.shape == (batch, num_classes)
    assert jnp.allclose(out, ref, atol=1e-5, rtol=1e-5), "mismatch vs JAX reference"

    print("KERNEL_OK")
</pallas_src>

<mosaic_0001>
module attributes {stable_mosaic.version = 11 : i64} {
  func.func @rnn_fc_kernel(%arg0: memref<8x8x16xf32, #tpu.memory_space<vmem>>, %arg1: memref<48x32xf32, #tpu.memory_space<vmem>>, %arg2: memref<1x32xf32, #tpu.memory_space<vmem>>, %arg3: memref<64x32xf32, #tpu.memory_space<vmem>>, %arg4: memref<1x32xf32, #tpu.memory_space<vmem>>, %arg5: memref<256x128xf32, #tpu.memory_space<vmem>>, %arg6: memref<1x128xf32, #tpu.memory_space<vmem>>, %arg7: memref<8x128xf32, #tpu.memory_space<vmem>>, %arg8: memref<8x48xf32, #tpu.memory_space<vmem>>, %arg9: memref<8x64xf32, #tpu.memory_space<vmem>>, %arg10: memref<8x256xf32, #tpu.memory_space<vmem>>) attributes {dimension_semantics = [], scalar_prefetch = 0 : i64, scratch_operands = 3 : i64, tpu.core_type = #tpu.core_type<tc>} {
    %c0 = arith.constant 0 : index
    %c0_0 = arith.constant 0 : index
    %0 = vector.load %arg2[%c0, %c0_0] : memref<1x32xf32, #tpu.memory_space<vmem>>, vector<1x32xf32>
    %1 = vector.shape_cast %0 : vector<1x32xf32> to vector<1x32xf32>
    %2 = vector.broadcast %1 : vector<1x32xf32> to vector<8x32xf32>
    %c0_1 = arith.constant 0 : index
    %c0_2 = arith.constant 0 : index
    %3 = vector.load %arg4[%c0_1, %c0_2] : memref<1x32xf32, #tpu.memory_space<vmem>>, vector<1x32xf32>
    %4 = vector.shape_cast %3 : vector<1x32xf32> to vector<1x32xf32>
    %5 = vector.broadcast %4 : vector<1x32xf32> to vector<8x32xf32>
    %cst = arith.constant 0.000000e+00 : f32
    %6 = vector.broadcast %cst : f32 to vector<8x32xf32>
    %c0_3 = arith.constant 0 : index
    %c16 = arith.constant 16 : index
    %7 = vector.load %arg8[%c0_3, %c16] : memref<8x48xf32, #tpu.memory_space<vmem>>, vector<8x32xf32>
    tpu.vector_store %arg8[%c0_3, %c16], %6 {strides = array<i32>} : memref<8x48xf32, #tpu.memory_space<vmem>>, vector<8x32xf32>,
    %cst_4 = arith.constant 0.000000e+00 : f32
    %8 = vector.broadcast %cst_4 : f32 to vector<8x32xf32>
    %c0_5 = arith.constant 0 : index
    %c32 = arith.constant 32 : index
    %9 = vector.load %arg9[%c0_5, %c32] : memref<8x64xf32, #tpu.memory_space<vmem>>, vector<8x32xf32>
    tpu.vector_store %arg9[%c0_5, %c32], %8 {strides = array<i32>} : memref<8x64xf32, #tpu.memory_space<vmem>>, vector<8x32xf32>,
    %c0_6 = arith.constant 0 : index
    %c0_7 = arith.constant 0 : index
    %c0_8 = arith.constant 0 : index
    %10 = vector.load %arg0[%c0_6, %c0_7, %c0_8] : memref<8x8x16xf32, #tpu.memory_space<vmem>>, vector<1x8x16xf32>
    %11 = vector.shape_cast %10 : vector<1x8x16xf32> to vector<8x16xf32>
    %c0_9 = arith.constant 0 : index
    %c0_10 = arith.constant 0 : index
    %12 = vector.load %arg8[%c0_9, %c0_10] : memref<8x48xf32, #tpu.memory_space<vmem>>, vector<8x16xf32>
    tpu.vector_store %arg8[%c0_9, %c0_10], %11 {strides = array<i32>} : memref<8x48xf32, #tpu.memory_space<vmem>>, vector<8x16xf32>,
    %c0_11 = arith.constant 0 : index
    %c0_12 = arith.constant 0 : index
    %13 = vector.load %arg8[%c0_11, %c0_12] : memref<8x48xf32, #tpu.memory_space<vmem>>, vector<8x48xf32>
    %c0_13 = arith.constant 0 : index
    %c0_14 = arith.constant 0 : index
    %14 = vector.load %arg1[%c0_13, %c0_14] : memref<48x32xf32, #tpu.memory_space<vmem>>, vector<48x32xf32>
    %cst_15 = arith.constant dense<0.000000e+00> : vector<8x32xf32>
    %15 = tpu.matmul %13, %14, %cst_15 {dimension_numbers = #tpu.dot_dimension_numbers<[1], [0], [0], [1], [0, 0, 1, 1], [], []>} : vector<8x48xf32>, vector<48x32xf32>, vector<8x32xf32> -> vector<8x32xf32>
    %16 = arith.addf %15, %2 : vector<8x32xf32>
    %17 = math.tanh %16 : vector<8x32xf32>
    %c0_16 = arith.constant 0 : index
    %c0_17 = arith.constant 0 : index
    %18 = vector.load %arg9[%c0_16, %c0_17] : memref<8x64xf32, #tpu.memory_space<vmem>>, vector<8x32xf32>
    tpu.vector_store %arg9[%c0_16, %c0_17], %17 {strides = array<i32>} : memref<8x64xf32, #tpu.memory_space<vmem>>, vector<8x32xf32>,
    %c0_18 = arith.constant 0 : index
    %c0_19 = arith.constant 0 : index
    %19 = vector.load %arg9[%c0_18, %c0_19] : memref<8x64xf32, #tpu.memory_space<vmem>>, vector<8x64xf32>
    %c0_20 = arith.constant 0 : index
    %c0_21 = arith.constant 0 : index
    %20 = vector.load %arg3[%c0_20, %c0_21] : memref<64x32xf32, #tpu.memory_space<vmem>>, vector<64x32xf32>
    %cst_22 = arith.constant dense<0.000000e+00> : vector<8x32xf32>
    %21 = tpu.matmul %19, %20, %cst_22 {dimension_numbers = #tpu.dot_dimension_numbers<[1], [0], [0], [1], [0, 0, 1, 1], [], []>} : vector<8x64xf32>, vector<64x32xf32>, vector<8x32xf32> -> vector<8x32xf32>
    %22 = arith.addf %21, %5 : vector<8x32xf32>
    %23 = math.tanh %22 : vector<8x32xf32>
    %c0_23 = arith.constant 0 : index
    %c16_24 = arith.constant 16 : index
    %24 = vector.load %arg8[%c0_23, %c16_24] : memref<8x48xf32, #tpu.memory_space<vmem>>, vector<8x32xf32>
    tpu.vector_store %arg8[%c0_23, %c16_24], %17 {strides = array<i32>} : memref<8x48xf32, #tpu.memory_space<vmem>>, vector<8x32xf32>,
    %c0_25 = arith.constant 0 : index
    %c32_26 = arith.constant 32 : index
    %25 = vector.load %arg9[%c0_25, %c32_26] : memref<8x64xf32, #tpu.memory_space<vmem>>, vector<8x32xf32>
    tpu.vector_store %arg9[%c0_25, %c32_26], %23 {strides = array<i32>} : memref<8x64xf32, #tpu.memory_space<vmem>>, vector<8x32xf32>,
    %c0_27 = arith.constant 0 : index
    %c0_28 = arith.constant 0 : index
    %26 = vector.load %arg10[%c0_27, %c0_28] : memref<8x256xf32, #tpu.memory_space<vmem>>, vector<8x32xf32>
    tpu.vector_store %arg10[%c0_27, %c0_28], %23 {strides = array<i32>} : memref<8x256xf32, #tpu.memory_space<vmem>>, vector<8x32xf32>,
    %c1 = arith.constant 1 : index
    %c0_29 = arith.constant 0 : index
    %c0_30 = arith.constant 0 : index
    %27 = vector.load %arg0[%c1, %c0_29, %c0_30] : memref<8x8x16xf32, #tpu.memory_space<vmem>>, vector<1x8x16xf32>
    %28 = vector.shape_cast %27 : vector<1x8x16xf32> to vector<8x16xf32>
    %c0_31 = arith.constant 0 : index
    %c0_32 = arith.constant 0 : index
    %29 = vector.load %arg8[%c0_31, %c0_32] : memref<8x48xf32, #tpu.memory_space<vmem>>, vector<8x16xf32>
    tpu.vector_store %arg8[%c0_31, %c0_32], %28 {strides = array<i32>} : memref<8x48xf32, #tpu.memory_space<vmem>>, vector<8x16xf32>,
    %c0_33 = arith.constant 0 : index
    %c0_34 = arith.constant 0 : index
    %30 = vector.load %arg8[%c0_33, %c0_34] : memref<8x48xf32, #tpu.memory_space<vmem>>, vector<8x48xf32>
    %c0_35 = arith.constant 0 : index
    %c0_36 = arith.constant 0 : index
    %31 = vector.load %arg1[%c0_35, %c0_36] : memref<48x32xf32, #tpu.memory_space<vmem>>, vector<48x32xf32>
    %cst_37 = arith.constant dense<0.000000e+00> : vector<8x32xf32>
    %32 = tpu.matmul %30, %31, %cst_37 {dimension_numbers = #tpu.dot_dimension_numbers<[1], [0], [0], [1], [0, 0, 1, 1], [], []>} : vector<8x48xf32>, vector<48x32xf32>, vector<8x32xf32> -> vector<8x32xf32>
    %33 = arith.addf %32, %2 : vector<8x32xf32>
    %34 = math.tanh %33 : vector<8x32xf32>
    %c0_38 = arith.constant 0 : index
    %c0_39 = arith.constant 0 : index
    %35 = vector.load %arg9[%c0_38, %c0_39] : memref<8x64xf32, #tpu.memory_space<vmem>>, vector<8x32xf32>
    tpu.vector_store %arg9[%c0_38, %c0_39], %34 {strides = array<i32>} : memref<8x64xf32, #tpu.memory_space<vmem>>, vector<8x32xf32>,
    %c0_40 = arith.constant 0 : index
    %c0_41 = arith.constant 0 : index
    %36 = vector.load %arg9[%c0_40, %c0_41] : memref<8x64xf32, #tpu.memory_space<vmem>>, vector<8x64xf32>
    %c0_42 = arith.constant 0 : index
    %c0_43 = arith.constant 0 : index
    %37 = vector.load %arg3[%c0_42, %c0_43] : memref<64x32xf32, #tpu.memory_space<vmem>>, vector<64x32xf32>
    %cst_44 = arith.constant dense<0.000000e+00> : vector<8x32xf32>
    %38 = tpu.matmul %36, %37, %cst_44 {dimension_numbers = #tpu.dot_dimension_numbers<[1], [0], [0], [1], [0, 0, 1, 1], [], []>} : vector<8x64xf32>, vector<64x32xf32>, vector<8x32xf32> -> vector<8x32xf32>
    %39 = arith.addf %38, %5 : vector<8x32xf32>
    %40 = math.tanh %39 : vector<8x32xf32>
    %c0_45 = arith.constant 0 : index
    %c16_46 = arith.constant 16 : index
    %41 = vector.load %arg8[%c0_45, %c16_46] : memref<8x48xf32, #tpu.memory_space<vmem>>, vector<8x32xf32>
    tpu.vector_store %arg8[%c0_45, %c16_46], %34 {strides = array<i32>} : memref<8x48xf32, #tpu.memory_space<vmem>>, vector<8x32xf32>,
    %c0_47 = arith.constant 0 : index
    %c32_48 = arith.constant 32 : index
    %42 = vector.load %arg9[%c0_47, %c32_48] : memref<8x64xf32, #tpu.memory_space<vmem>>, vector<8x32xf32>
    tpu.vector_store %arg9[%c0_47, %c32_48], %40 {strides = array<i32>} : memref<8x64xf32, #tpu.memory_space<vmem>>, vector<8x32xf32>,
    %c0_49 = arith.constant 0 : index
    %c32_50 = arith.constant 32 : index
    %43 = vector.load %arg10[%c0_49, %c32_50] : memref<8x256xf32, #tpu.memory_space<vmem>>, vector<8x32xf32>
    tpu.vector_store %arg10[%c0_49, %c32_50], %40 {strides = array<i32>} : memref<8x256xf32, #tpu.memory_space<vmem>>, vector<8x32xf32>,
    %c2 = arith.constant 2 : index
    %c0_51 = arith.constant 0 : index
    %c0_52 = arith.constant 0 : index
    %44 = vector.load %arg0[%c2, %c0_51, %c0_52] : memref<8x8x16xf32, #tpu.memory_space<vmem>>, vector<1x8x16xf32>
    %45 = vector.shape_cast %44 : vector<1x8x16xf32> to vector<8x16xf32>
    %c0_53 = arith.constant 0 : index
    %c0_54 = arith.constant 0 : index
    %46 = vector.load %arg8[%c0_53, %c0_54] : memref<8x48xf32, #tpu.memory_space<vmem>>, vector<8x16xf32>
    tpu.vector_store %arg8[%c0_53, %c0_54], %45 {strides = array<i32>} : memref<8x48xf32, #tpu.memory_space<vmem>>, vector<8x16xf32>,
    %c0_55 = arith.constant 0 : index
    %c0_56 = arith.constant 0 : index
    %47 = vector.load %arg8[%c0_55, %c0_56] : memref<8x48xf32, #tpu.memory_space<vmem>>, vector<8x48xf32>
    %c0_57 = arith.constant 0 : index
    %c0_58 = arith.constant 0 : index
    %48 = vector.load %arg1[%c0_57, %c0_58] : memref<48x32xf32, #tpu.memory_space<vmem>>, vector<48x32xf32>
    %cst_59 = arith.constant dense<0.000000e+00> : vector<8x32xf32>
    %49 = tpu.matmul %47, %48, %cst_59 {dimension_numbers = #tpu.dot_dimension_numbers<[1], [0], [0], [1], [0, 0, 1, 1], [], []>} : vector<8x48xf32>, vector<48x32xf32>, vector<8x32xf32> -> vector<8x32xf32>
    %50 = arith.addf %49, %2 : vector<8x32xf32>
    %51 = math.tanh %50 : vector<8x32xf32>
    %c0_60 = arith.constant 0 : index
    %c0_61 = arith.constant 0 : index
    %52 = vector.load %arg9[%c0_60, %c0_61] : memref<8x64xf32, #tpu.memory_space<vmem>>, vector<8x32xf32>
    tpu.vector_store %arg9[%c0_60, %c0_61], %51 {strides = array<i32>} : memref<8x64xf32, #tpu.memory_space<vmem>>, vector<8x32xf32>,
    %c0_62 = arith.constant 0 : index
    %c0_63 = arith.constant 0 : index
    %53 = vector.load %arg9[%c0_62, %c0_63] : memref<8x64xf32, #tpu.memory_space<vmem>>, vector<8x64xf32>
    %c0_64 = arith.constant 0 : index
    %c0_65 = arith.constant 0 : index
    %54 = vector.load %arg3[%c0_64, %c0_65] : memref<64x32xf32, #tpu.memory_space<vmem>>, vector<64x32xf32>
    %cst_66 = arith.constant dense<0.000000e+00> : vector<8x32xf32>
    %55 = tpu.matmul %53, %54, %cst_66 {dimension_numbers = #tpu.dot_dimension_numbers<[1], [0], [0], [1], [0, 0, 1, 1], [], []>} : vector<8x64xf32>, vector<64x32xf32>, vector<8x32xf32> -> vector<8x32xf32>
    %56 = arith.addf %55, %5 : vector<8x32xf32>
    %57 = math.tanh %56 : vector<8x32xf32>
    %c0_67 = arith.constant 0 : index
    %c16_68 = arith.constant 16 : index
    %58 = vector.load %arg8[%c0_67, %c16_68] : memref<8x48xf32, #tpu.memory_space<vmem>>, vector<8x32xf32>
    tpu.vector_store %arg8[%c0_67, %c16_68], %51 {strides = array<i32>} : memref<8x48xf32, #tpu.memory_space<vmem>>, vector<8x32xf32>,
    %c0_69 = arith.constant 0 : index
    %c32_70 = arith.constant 32 : index
    %59 = vector.load %arg9[%c0_69, %c32_70] : memref<8x64xf32, #tpu.memory_space<vmem>>, vector<8x32xf32>
    tpu.vector_store %arg9[%c0_69, %c32_70], %57 {strides = array<i32>} : memref<8x64xf32, #tpu.memory_space<vmem>>, vector<8x32xf32>,
    %c0_71 = arith.constant 0 : index
    %c64 = arith.constant 64 : index
    %60 = vector.load %arg10[%c0_71, %c64] : memref<8x256xf32, #tpu.memory_space<vmem>>, vector<8x32xf32>
    tpu.vector_store %arg10[%c0_71, %c64], %57 {strides = array<i32>} : memref<8x256xf32, #tpu.memory_space<vmem>>, vector<8x32xf32>,
    %c3 = arith.constant 3 : index
    %c0_72 = arith.constant 0 : index
    %c0_73 = arith.constant 0 : index
    %61 = vector.load %arg0[%c3, %c0_72, %c0_73] : memref<8x8x16xf32, #tpu.memory_space<vmem>>, vector<1x8x16xf32>
    %62 = vector.shape_cast %61 : vector<1x8x16xf32> to vector<8x16xf32>
    %c0_74 = arith.constant 0 : index
    %c0_75 = arith.constant 0 : index
    %63 = vector.load %arg8[%c0_74, %c0_75] : memref<8x48xf32, #tpu.memory_space<vmem>>, vector<8x16xf32>
    tpu.vector_store %arg8[%c0_74, %c0_75], %62 {strides = array<i32>} : memref<8x48xf32, #tpu.memory_space<vmem>>, vector<8x16xf32>,
    %c0_76 = arith.constant 0 : index
    %c0_77 = arith.constant 0 : index
    %64 = vector.load %arg8[%c0_76, %c0_77] : memref<8x48xf32, #tpu.memory_space<vmem>>, vector<8x48xf32>
    %c0_78 = arith.constant 0 : index
    %c0_79 = arith.constant 0 : index
    %65 = vector.load %arg1[%c0_78, %c0_79] : memref<48x32xf32, #tpu.memory_space<vmem>>, vector<48x32xf32>
    %cst_80 = arith.constant dense<0.000000e+00> : vector<8x32xf32>
    %66 = tpu.matmul %64, %65, %cst_80 {dimension_numbers = #tpu.dot_dimension_numbers<[1], [0], [0], [1], [0, 0, 1, 1], [], []>} : vector<8x48xf32>, vector<48x32xf32>, vector<8x32xf32> -> vector<8x32xf32>
    %67 = arith.addf %66, %2 : vector<8x32xf32>
    %68 = math.tanh %67 : vector<8x32xf32>
    %c0_81 = arith.constant 0 : index
    %c0_82 = arith.constant 0 : index
    %69 = vector.load %arg9[%c0_81, %c0_82] : memref<8x64xf32, #tpu.memory_space<vmem>>, vector<8x32xf32>
    tpu.vector_store %arg9[%c0_81, %c0_82], %68 {strides = array<i32>} : memref<8x64xf32, #tpu.memory_space<vmem>>, vector<8x32xf32>,
    %c0_83 = arith.constant 0 : index
    %c0_84 = arith.constant 0 : index
    %70 = vector.load %arg9[%c0_83, %c0_84] : memref<8x64xf32, #tpu.memory_space<vmem>>, vector<8x64xf32>
    %c0_85 = arith.constant 0 : index
    %c0_86 = arith.constant 0 : index
    %71 = vector.load %arg3[%c0_85, %c0_86] : memref<64x32xf32, #tpu.memory_space<vmem>>, vector<64x32xf32>
    %cst_87 = arith.constant dense<0.000000e+00> : vector<8x32xf32>
    %72 = tpu.matmul %70, %71, %cst_87 {dimension_numbers = #tpu.dot_dimension_numbers<[1], [0], [0], [1], [0, 0, 1, 1], [], []>} : vector<8x64xf32>, vector<64x32xf32>, vector<8x32xf32> -> vector<8x32xf32>
    %73 = arith.addf %72, %5 : vector<8x32xf32>
    %74 = math.tanh %73 : vector<8x32xf32>
    %c0_88 = arith.constant 0 : index
    %c16_89 = arith.constant 16 : index
    %75 = vector.load %arg8[%c0_88, %c16_89] : memref<8x48xf32, #tpu.memory_space<vmem>>, vector<8x32xf32>
    tpu.vector_store %arg8[%c0_88, %c16_89], %68 {strides = array<i32>} : memref<8x48xf32, #tpu.memory_space<vmem>>, vector<8x32xf32>,
    %c0_90 = arith.constant 0 : index
    %c32_91 = arith.constant 32 : index
    %76 = vector.load %arg9[%c0_90, %c32_91] : memref<8x64xf32, #tpu.memory_space<vmem>>, vector<8x32xf32>
    tpu.vector_store %arg9[%c0_90, %c32_91], %74 {strides = array<i32>} : memref<8x64xf32, #tpu.memory_space<vmem>>, vector<8x32xf32>,
    %c0_92 = arith.constant 0 : index
    %c96 = arith.constant 96 : index
    %77 = vector.load %arg10[%c0_92, %c96] : memref<8x256xf32, #tpu.memory_space<vmem>>, vector<8x32xf32>
    tpu.vector_store %arg10[%c0_92, %c96], %74 {strides = array<i32>} : memref<8x256xf32, #tpu.memory_space<vmem>>, vector<8x32xf32>,
    %c4 = arith.constant 4 : index
    %c0_93 = arith.constant 0 : index
    %c0_94 = arith.constant 0 : index
    %78 = vector.load %arg0[%c4, %c0_93, %c0_94] : memref<8x8x16xf32, #tpu.memory_space<vmem>>, vector<1x8x16xf32>
    %79 = vector.shape_cast %78 : vector<1x8x16xf32> to vector<8x16xf32>
    %c0_95 = arith.constant 0 : index
    %c0_96 = arith.constant 0 : index
    %80 = vector.load %arg8[%c0_95, %c0_96] : memref<8x48xf32, #tpu.memory_space<vmem>>, vector<8x16xf32>
    tpu.vector_store %arg8[%c0_95, %c0_96], %79 {strides = array<i32>} : memref<8x48xf32, #tpu.memory_space<vmem>>, vector<8x16xf32>,
    %c0_97 = arith.constant 0 : index
    %c0_98 = arith.constant 0 : index
    %81 = vector.load %arg8[%c0_97, %c0_98] : memref<8x48xf32, #tpu.memory_space<vmem>>, vector<8x48xf32>
    %c0_99 = arith.constant 0 : index
    %c0_100 = arith.constant 0 : index
    %82 = vector.load %arg1[%c0_99, %c0_100] : memref<48x32xf32, #tpu.memory_space<vmem>>, vector<48x32xf32>
    %cst_101 = arith.constant dense<0.000000e+00> : vector<8x32xf32>
    %83 = tpu.matmul %81, %82, %cst_101 {dimension_numbers = #tpu.dot_dimension_numbers<[1], [0], [0], [1], [0, 0, 1, 1], [], []>} : vector<8x48xf32>, vector<48x32xf32>, vector<8x32xf32> -> vector<8x32xf32>
    %84 = arith.addf %83, %2 : vector<8x32xf32>
    %85 = math.tanh %84 : vector<8x32xf32>
    %c0_102 = arith.constant 0 : index
    %c0_103 = arith.constant 0 : index
    %86 = vector.load %arg9[%c0_102, %c0_103] : memref<8x64xf32, #tpu.memory_space<vmem>>, vector<8x32xf32>
    tpu.vector_store %arg9[%c0_102, %c0_103], %85 {strides = array<i32>} : memref<8x64xf32, #tpu.memory_space<vmem>>, vector<8x32xf32>,
    %c0_104 = arith.constant 0 : index
    %c0_105 = arith.constant 0 : index
    %87 = vector.load %arg9[%c0_104, %c0_105] : memref<8x64xf32, #tpu.memory_space<vmem>>, vector<8x64xf32>
    %c0_106 = arith.constant 0 : index
    %c0_107 = arith.constant 0 : index
    %88 = vector.load %arg3[%c0_106, %c0_107] : memref<64x32xf32, #tpu.memory_space<vmem>>, vector<64x32xf32>
    %cst_108 = arith.constant dense<0.000000e+00> : vector<8x32xf32>
    %89 = tpu.matmul %87, %88, %cst_108 {dimension_numbers = #tpu.dot_dimension_numbers<[1], [0], [0], [1], [0, 0, 1, 1], [], []>} : vector<8x64xf32>, vector<64x32xf32>, vector<8x32xf32> -> vector<8x32xf32>
    %90 = arith.addf %89, %5 : vector<8x32xf32>
    %91 = math.tanh %90 : vector<8x32xf32>
    %c0_109 = arith.constant 0 : index
    %c16_110 = arith.constant 16 : index
    %92 = vector.load %arg8[%c0_109, %c16_110] : memref<8x48xf32, #tpu.memory_space<vmem>>, vector<8x32xf32>
    tpu.vector_store %arg8[%c0_109, %c16_110], %85 {strides = array<i32>} : memref<8x48xf32, #tpu.memory_space<vmem>>, vector<8x32xf32>,
    %c0_111 = arith.constant 0 : index
    %c32_112 = arith.constant 32 : index
    %93 = vector.load %arg9[%c0_111, %c32_112] : memref<8x64xf32, #tpu.memory_space<vmem>>, vector<8x32xf32>
    tpu.vector_store %arg9[%c0_111, %c32_112], %91 {strides = array<i32>} : memref<8x64xf32, #tpu.memory_space<vmem>>, vector<8x32xf32>,
    %c0_113 = arith.constant 0 : index
    %c128 = arith.constant 128 : index
    %94 = vector.load %arg10[%c0_113, %c128] : memref<8x256xf32, #tpu.memory_space<vmem>>, vector<8x32xf32>
    tpu.vector_store %arg10[%c0_113, %c128], %91 {strides = array<i32>} : memref<8x256xf32, #tpu.memory_space<vmem>>, vector<8x32xf32>,
    %c5 = arith.constant 5 : index
    %c0_114 = arith.constant 0 : index
    %c0_115 = arith.constant 0 : index
    %95 = vector.load %arg0[%c5, %c0_114, %c0_115] : memref<8x8x16xf32, #tpu.memory_space<vmem>>, vector<1x8x16xf32>
    %96 = vector.shape_cast %95 : vector<1x8x16xf32> to vector<8x16xf32>
    %c0_116 = arith.constant 0 : index
    %c0_117 = arith.constant 0 : index
    %97 = vector.load %arg8[%c0_116, %c0_117] : memref<8x48xf32, #tpu.memory_space<vmem>>, vector<8x16xf32>
    tpu.vector_store %arg8[%c0_116, %c0_117], %96 {strides = array<i32>} : memref<8x48xf32, #tpu.memory_space<vmem>>, vector<8x16xf32>,
    %c0_118 = arith.constant 0 : index
    %c0_119 = arith.constant 0 : index
    %98 = vector.load %arg8[%c0_118, %c0_119] : memref<8x48xf32, #tpu.memory_space<vmem>>, vector<8x48xf32>
    %c0_120 = arith.constant 0 : index
    %c0_121 = arith.constant 0 : index
    %99 = vector.load %arg1[%c0_120, %c0_121] : memref<48x32xf32, #tpu.memory_space<vmem>>, vector<48x32xf32>
    %cst_122 = arith.constant dense<0.000000e+00> : vector<8x32xf32>
    %100 = tpu.matmul %98, %99, %cst_122 {dimension_numbers = #tpu.dot_dimension_numbers<[1], [0], [0], [1], [0, 0, 1, 1], [], []>} : vector<8x48xf32>, vector<48x32xf32>, vector<8x32xf32> -> vector<8x32xf32>
    %101 = arith.addf %100, %2 : vector<8x32xf32>
    %102 = math.tanh %101 : vector<8x32xf32>
    %c0_123 = arith.constant 0 : index
    %c0_124 = arith.constant 0 : index
    %103 = vector.load %arg9[%c0_123, %c0_124] : memref<8x64xf32, #tpu.memory_space<vmem>>, vector<8x32xf32>
    tpu.vector_store %arg9[%c0_123, %c0_124], %102 {strides = array<i32>} : memref<8x64xf32, #tpu.memory_space<vmem>>, vector<8x32xf32>,
    %c0_125 = arith.constant 0 : index
    %c0_126 = arith.constant 0 : index
    %104 = vector.load %arg9[%c0_125, %c0_126] : memref<8x64xf32, #tpu.memory_space<vmem>>, vector<8x64xf32>
    %c0_127 = arith.constant 0 : index
    %c0_128 = arith.constant 0 : index
    %105 = vector.load %arg3[%c0_127, %c0_128] : memref<64x32xf32, #tpu.memory_space<vmem>>, vector<64x32xf32>
    %cst_129 = arith.constant dense<0.000000e+00> : vector<8x32xf32>
    %106 = tpu.matmul %104, %105, %cst_129 {dimension_numbers = #tpu.dot_dimension_numbers<[1], [0], [0], [1], [0, 0, 1, 1], [], []>} : vector<8x64xf32>, vector<64x32xf32>, vector<8x32xf32> -> vector<8x32xf32>
    %107 = arith.addf %106, %5 : vector<8x32xf32>
    %108 = math.tanh %107 : vector<8x32xf32>
    %c0_130 = arith.constant 0 : index
    %c16_131 = arith.constant 16 : index
    %109 = vector.load %arg8[%c0_130, %c16_131] : memref<8x48xf32, #tpu.memory_space<vmem>>, vector<8x32xf32>
    tpu.vector_store %arg8[%c0_130, %c16_131], %102 {strides = array<i32>} : memref<8x48xf32, #tpu.memory_space<vmem>>, vector<8x32xf32>,
    %c0_132 = arith.constant 0 : index
    %c32_133 = arith.constant 32 : index
    %110 = vector.load %arg9[%c0_132, %c32_133] : memref<8x64xf32, #tpu.memory_space<vmem>>, vector<8x32xf32>
    tpu.vector_store %arg9[%c0_132, %c32_133], %108 {strides = array<i32>} : memref<8x64xf32, #tpu.memory_space<vmem>>, vector<8x32xf32>,
    %c0_134 = arith.constant 0 : index
    %c160 = arith.constant 160 : index
    %111 = vector.load %arg10[%c0_134, %c160] : memref<8x256xf32, #tpu.memory_space<vmem>>, vector<8x32xf32>
    tpu.vector_store %arg10[%c0_134, %c160], %108 {strides = array<i32>} : memref<8x256xf32, #tpu.memory_space<vmem>>, vector<8x32xf32>,
    %c6 = arith.constant 6 : index
    %c0_135 = arith.constant 0 : index
    %c0_136 = arith.constant 0 : index
    %112 = vector.load %arg0[%c6, %c0_135, %c0_136] : memref<8x8x16xf32, #tpu.memory_space<vmem>>, vector<1x8x16xf32>
    %113 = vector.shape_cast %112 : vector<1x8x16xf32> to vector<8x16xf32>
    %c0_137 = arith.constant 0 : index
    %c0_138 = arith.constant 0 : index
    %114 = vector.load %arg8[%c0_137, %c0_138] : memref<8x48xf32, #tpu.memory_space<vmem>>, vector<8x16xf32>
    tpu.vector_store %arg8[%c0_137, %c0_138], %113 {strides = array<i32>} : memref<8x48xf32, #tpu.memory_space<vmem>>, vector<8x16xf32>,
    %c0_139 = arith.constant 0 : index
    %c0_140 = arith.constant 0 : index
    %115 = vector.load %arg8[%c0_139, %c0_140] : memref<8x48xf32, #tpu.memory_space<vmem>>, vector<8x48xf32>
    %c0_141 = arith.constant 0 : index
    %c0_142 = arith.constant 0 : index
    %116 = vector.load %arg1[%c0_141, %c0_142] : memref<48x32xf32, #tpu.memory_space<vmem>>, vector<48x32xf32>
    %cst_143 = arith.constant dense<0.000000e+00> : vector<8x32xf32>
    %117 = tpu.matmul %115, %116, %cst_143 {dimension_numbers = #tpu.dot_dimension_numbers<[1], [0], [0], [1], [0, 0, 1, 1], [], []>} : vector<8x48xf32>, vector<48x32xf32>, vector<8x32xf32> -> vector<8x32xf32>
    %118 = arith.addf %117, %2 : vector<8x32xf32>
    %119 = math.tanh %118 : vector<8x32xf32>
    %c0_144 = arith.constant 0 : index
    %c0_145 = arith.constant 0 : index
    %120 = vector.load %arg9[%c0_144, %c0_145] : memref<8x64xf32, #tpu.memory_space<vmem>>, vector<8x32xf32>
    tpu.vector_store %arg9[%c0_144, %c0_145], %119 {strides = array<i32>} : memref<8x64xf32, #tpu.memory_space<vmem>>, vector<8x32xf32>,
    %c0_146 = arith.constant 0 : index
    %c0_147 = arith.constant 0 : index
    %121 = vector.load %arg9[%c0_146, %c0_147] : memref<8x64xf32, #tpu.memory_space<vmem>>, vector<8x64xf32>
    %c0_148 = arith.constant 0 : index
    %c0_149 = arith.constant 0 : index
    %122 = vector.load %arg3[%c0_148, %c0_149] : memref<64x32xf32, #tpu.memory_space<vmem>>, vector<64x32xf32>
    %cst_150 = arith.constant dense<0.000000e+00> : vector<8x32xf32>
    %123 = tpu.matmul %121, %122, %cst_150 {dimension_numbers = #tpu.dot_dimension_numbers<[1], [0], [0], [1], [0, 0, 1, 1], [], []>} : vector<8x64xf32>, vector<64x32xf32>, vector<8x32xf32> -> vector<8x32xf32>
    %124 = arith.addf %123, %5 : vector<8x32xf32>
    %125 = math.tanh %124 : vector<8x32xf32>
    %c0_151 = arith.constant 0 : index
    %c16_152 = arith.constant 16 : index
    %126 = vector.load %arg8[%c0_151, %c16_152] : memref<8x48xf32, #tpu.memory_space<vmem>>, vector<8x32xf32>
    tpu.vector_store %arg8[%c0_151, %c16_152], %119 {strides = array<i32>} : memref<8x48xf32, #tpu.memory_space<vmem>>, vector<8x32xf32>,
    %c0_153 = arith.constant 0 : index
    %c32_154 = arith.constant 32 : index
    %127 = vector.load %arg9[%c0_153, %c32_154] : memref<8x64xf32, #tpu.memory_space<vmem>>, vector<8x32xf32>
    tpu.vector_store %arg9[%c0_153, %c32_154], %125 {strides = array<i32>} : memref<8x64xf32, #tpu.memory_space<vmem>>, vector<8x32xf32>,
    %c0_155 = arith.constant 0 : index
    %c192 = arith.constant 192 : index
    %128 = vector.load %arg10[%c0_155, %c192] : memref<8x256xf32, #tpu.memory_space<vmem>>, vector<8x32xf32>
    tpu.vector_store %arg10[%c0_155, %c192], %125 {strides = array<i32>} : memref<8x256xf32, #tpu.memory_space<vmem>>, vector<8x32xf32>,
    %c7 = arith.constant 7 : index
    %c0_156 = arith.constant 0 : index
    %c0_157 = arith.constant 0 : index
    %129 = vector.load %arg0[%c7, %c0_156, %c0_157] : memref<8x8x16xf32, #tpu.memory_space<vmem>>, vector<1x8x16xf32>
    %130 = vector.shape_cast %129 : vector<1x8x16xf32> to vector<8x16xf32>
    %c0_158 = arith.constant 0 : index
    %c0_159 = arith.constant 0 : index
    %131 = vector.load %arg8[%c0_158, %c0_159] : memref<8x48xf32, #tpu.memory_space<vmem>>, vector<8x16xf32>
    tpu.vector_store %arg8[%c0_158, %c0_159], %130 {strides = array<i32>} : memref<8x48xf32, #tpu.memory_space<vmem>>, vector<8x16xf32>,
    %c0_160 = arith.constant 0 : index
    %c0_161 = arith.constant 0 : index
    %132 = vector.load %arg8[%c0_160, %c0_161] : memref<8x48xf32, #tpu.memory_space<vmem>>, vector<8x48xf32>
    %c0_162 = arith.constant 0 : index
    %c0_163 = arith.constant 0 : index
    %133 = vector.load %arg1[%c0_162, %c0_163] : memref<48x32xf32, #tpu.memory_space<vmem>>, vector<48x32xf32>
    %cst_164 = arith.constant dense<0.000000e+00> : vector<8x32xf32>
    %134 = tpu.matmul %132, %133, %cst_164 {dimension_numbers = #tpu.dot_dimension_numbers<[1], [0], [0], [1], [0, 0, 1, 1], [], []>} : vector<8x48xf32>, vector<48x32xf32>, vector<8x32xf32> -> vector<8x32xf32>
    %135 = arith.addf %134, %2 : vector<8x32xf32>
    %136 = math.tanh %135 : vector<8x32xf32>
    %c0_165 = arith.constant 0 : index
    %c0_166 = arith.constant 0 : index
    %137 = vector.load %arg9[%c0_165, %c0_166] : memref<8x64xf32, #tpu.memory_space<vmem>>, vector<8x32xf32>
    tpu.vector_store %arg9[%c0_165, %c0_166], %136 {strides = array<i32>} : memref<8x64xf32, #tpu.memory_space<vmem>>, vector<8x32xf32>,
    %c0_167 = arith.constant 0 : index
    %c0_168 = arith.constant 0 : index
    %138 = vector.load %arg9[%c0_167, %c0_168] : memref<8x64xf32, #tpu.memory_space<vmem>>, vector<8x64xf32>
    %c0_169 = arith.constant 0 : index
    %c0_170 = arith.constant 0 : index
    %139 = vector.load %arg3[%c0_169, %c0_170] : memref<64x32xf32, #tpu.memory_space<vmem>>, vector<64x32xf32>
    %cst_171 = arith.constant dense<0.000000e+00> : vector<8x32xf32>
    %140 = tpu.matmul %138, %139, %cst_171 {dimension_numbers = #tpu.dot_dimension_numbers<[1], [0], [0], [1], [0, 0, 1, 1], [], []>} : vector<8x64xf32>, vector<64x32xf32>, vector<8x32xf32> -> vector<8x32xf32>
    %141 = arith.addf %140, %5 : vector<8x32xf32>
    %142 = math.tanh %141 : vector<8x32xf32>
    %c0_172 = arith.constant 0 : index
    %c16_173 = arith.constant 16 : index
    %143 = vector.load %arg8[%c0_172, %c16_173] : memref<8x48xf32, #tpu.memory_space<vmem>>, vector<8x32xf32>
    tpu.vector_store %arg8[%c0_172, %c16_173], %136 {strides = array<i32>} : memref<8x48xf32, #tpu.memory_space<vmem>>, vector<8x32xf32>,
    %c0_174 = arith.constant 0 : index
    %c32_175 = arith.constant 32 : index
    %144 = vector.load %arg9[%c0_174, %c32_175] : memref<8x64xf32, #tpu.memory_space<vmem>>, vector<8x32xf32>
    tpu.vector_store %arg9[%c0_174, %c32_175], %142 {strides = array<i32>} : memref<8x64xf32, #tpu.memory_space<vmem>>, vector<8x32xf32>,
    %c0_176 = arith.constant 0 : index
    %c224 = arith.constant 224 : index
    %145 = vector.load %arg10[%c0_176, %c224] : memref<8x256xf32, #tpu.memory_space<vmem>>, vector<8x32xf32>
    tpu.vector_store %arg10[%c0_176, %c224], %142 {strides = array<i32>} : memref<8x256xf32, #tpu.memory_space<vmem>>, vector<8x32xf32>,
    %c0_177 = arith.constant 0 : index
    %c0_178 = arith.constant 0 : index
    %146 = vector.load %arg10[%c0_177, %c0_178] : memref<8x256xf32, #tpu.memory_space<vmem>>, vector<8x256xf32>
    %c0_179 = arith.constant 0 : index
    %c0_180 = arith.constant 0 : index
    %147 = vector.load %arg5[%c0_179, %c0_180] : memref<256x128xf32, #tpu.memory_space<vmem>>, vector<256x128xf32>
    %cst_181 = arith.constant dense<0.000000e+00> : vector<8x128xf32>
    %148 = tpu.matmul %146, %147, %cst_181 {dimension_numbers = #tpu.dot_dimension_numbers<[1], [0], [0], [1], [0, 0, 1, 1], [], []>} : vector<8x256xf32>, vector<256x128xf32>, vector<8x128xf32> -> vector<8x128xf32>
    %c0_182 = arith.constant 0 : index
    %c0_183 = arith.constant 0 : index
    %149 = vector.load %arg6[%c0_182, %c0_183] : memref<1x128xf32, #tpu.memory_space<vmem>>, vector<1x128xf32>
    %150 = vector.broadcast %149 : vector<1x128xf32> to vector<8x128xf32>
    %151 = arith.addf %148, %150 : vector<8x128xf32>
    %c0_184 = arith.constant 0 : index
    %c0_185 = arith.constant 0 : index
    %152 = vector.load %arg7[%c0_184, %c0_185] : memref<8x128xf32, #tpu.memory_space<vmem>>, vector<8x128xf32>
    tpu.vector_store %arg7[%c0_184, %c0_185], %151 {strides = array<i32>} : memref<8x128xf32, #tpu.memory_space<vmem>>, vector<8x128xf32>,
    return
  }
}

</mosaic_0001>

<bundles_post_ra>
// kernel: tpu_custom_call.1
= control target key start
LH: loop header
LB: loop body
LE: loop exit
PB: predicated region body
PF: predicated region fallthrough
CT: control target
= control target key end

     0   :  { %12 = vsyncpa [#allocation6], 0  ;;  %s1295_s0 = inlined_call_operand.vmem [shape: f32[8,8,16], index: 0, kind: input, shape index: {}]   ;;  %s1296_s1 = inlined_call_operand.vmem [shape: f32[48,32], index: 1, kind: input, shape index: {}]   ;;  %s1297_s2 = inlined_call_operand.vmem [shape: f32[1,32], index: 2, kind: input, shape index: {}]   ;;  %s1298_s3 = inlined_call_operand.vmem [shape: f32[64,32], index: 3, kind: input, shape index: {}]   ;;  %s1299_s4 = inlined_call_operand.vmem [shape: f32[1,32], index: 4, kind: input, shape index: {}]   ;;  %s1300_s5 = inlined_call_operand.hbm [shape: f32[256,128], index: 5, kind: input, shape index: {}]   ;;  %s1301_s6 = inlined_call_operand.vmem [shape: f32[1,128], index: 6, kind: input, shape index: {}]   ;;  %s1302_s7 = inlined_call_operand.hbm [shape: f32[8,128], index: 7, kind: output, shape index: {}]  }
   0x1   :  { %13 = vsyncpa [#allocation7], 0  ;;  %s28_s26 = sshll.u32 %s1300_s5, 4  ;;  %s919_s27 = smov [#allocation5]   ;;  %s29_s26 = int_to_ptr.hbm [resolvable:$true] %s28_s26 }
   0x2   :  { %s30_s28 = sshll.u32 %s919_s27, 4  ;;  %s920_s29 = smov 128   ;;  %s31_s28 = int_to_ptr.vmem [resolvable:$true] %s30_s28 }
   0x3   :  { %s921_s30 = smov 8  }
   0x4   :  { %36 = dma.hbm_to_vmem [thread:$0]  %s29_s26, 4096, %s31_s28, [#allocation6], %s920_s29, %s920_s29, %s921_s30  }
   0x5   :  { %915 = dma.done.wait [#allocation6], 4096  }
   0x6   :  { %916 = vsyncadd [#allocation6], 4294963200  ;;  %vm51_vm0 = vcmask 392320   ;;  %v922_v0 = vmov 0.0   ;;  %vm53_vm1 = vcmask 523520   ;;  %v976_v1 = vld [vmem:[%s1296_s1 + $0x28] sm:$0xff] }
   0x7   :  { %52 = vst.msk [vmem:[#allocation2] sm:$0xff] %vm51_vm0, %v922_v0  ;;  %v981_v2 = vld [vmem:[%s1296_s1 + $0x20] sm:$0xff]  ;;  %vm56_vm2 = vcmask 130048   ;;  %79 = vmatpush.msra.mxu0 %v976_v1  ;;  %322 = vmatpush.msra.mxu1 %v976_v1  ;;  %v988_v3 = vld [vmem:[%s1296_s1 + $0x18] sm:$0xff]  ;;  %v999_v5 = vld [vmem:[%s1296_s1 + $0x10] sm:$0xff]  ;;  %vm65_vm3 = vcmask 392192  }
   0x8   :  { %54 = vst.msk [vmem:[#allocation3] sm:$0xff] %vm53_vm1, %v922_v0  ;;  %v55_v4 = vld [vmem:[%s1295_s0] sm:$0xff]  ;;  %v1006_v6 = vld [vmem:[%s1296_s1 + $0x8] sm:$0xff]  ;;  %v1035_v9 = vld [vmem:[%s1298_s3 + $0x38] sm:$0xff]  ;;  %vm90_vm4 = vcmask 261120   ;;  %s923_s13 = smov 16  }
   0x9   :  { %80 = vmatpush.msra.mxu0 %v981_v2  ;;  %57 = vst.msk [vmem:[#allocation2] sm:$0xff] %vm56_vm2, %v55_v4  ;;  %323 = vmatpush.msra.mxu1 %v981_v2  ;;  %v1013_v7 = vld [vmem:[%s1296_s1] sm:$0xff]  ;;  %v1042_v10 = vld [vmem:[%s1298_s3 + $0x30] sm:$0xff]  ;;  %v1050_v11 = vld [vmem:[%s1298_s3 + $0x28] sm:$0xff]  ;;  %vm101_vm5 = vcmask 523264   ;;  %s924_s17 = smov 32  }
   0xa   :  { %113 = vmatpush.msra.mxu2 %v1035_v9  ;;  %192 = vmatpush.msra.mxu3 %v1035_v9  ;;  %v1058_v12 = vld [vmem:[%s1298_s3 + $0x20] sm:$0xff]  ;;  %v1066_v13 = vld [vmem:[%s1298_s3 + $0x18] sm:$0xff]  ;;  %v1071_v14 = vld [vmem:[%s1298_s3 + $0x10] sm:$0xff]  ;;  %s925_s26 = smov 64   ;;  %s926_s27 = smov 96   ;;  %vm297_vm6 = vcmask 785920  }
   0xb   :  { %81 = vmatpush.msra.mxu0 %v988_v3  ;;  %324 = vmatpush.msra.mxu1 %v988_v3  ;;  %v1079_v15 = vld [vmem:[%s1298_s3 + $0x8] sm:$0xff]  ;;  %v1087_v16 = vld [vmem:[%s1298_s3] sm:$0xff]  ;;  %v805_v34 = vld [vmem:[%s1295_s0 + $0x10] sm:$0xff]  ;;  %vm380_vm7 = vcmask 1048320   ;;  %s927_s8 = smov [#allocation8]   ;;  %s790_s11 = sshll.u32 %s1302_s7, 4  ;;  %s791_s11 = int_to_ptr.hbm [resolvable:$true] %s790_s11 }
   0xc   :  { %114 = vmatpush.msra.mxu2 %v1042_v10  ;;  %193 = vmatpush.msra.mxu3 %v1042_v10  ;;  %v1111_v17 = vld [vmem:[%s1297_s2] ss:$0 sm:$0xff]  ;;  %v802_v22 = vld [vmem:[%s1295_s0 + $0x8] sm:$0xff]  ;;  %v808_v45 = vld [vmem:[%s1295_s0 + $0x18] sm:$0xff]  ;;  %s788_s9 = sshll.u32 %s927_s8, 4  ;;  %s789_s9 = int_to_ptr.vmem [resolvable:$true] %s788_s9 }
   0xd   :  { %82 = vmatpush.msra.mxu0 %v999_v5  ;;  %325 = vmatpush.msra.mxu1 %v999_v5  ;;  %v1142_v25 = vld [vmem:[%s1299_s4] ss:$0 sm:$0xff] }
   0xe   :  { %115 = vmatpush.msra.mxu2 %v1050_v11  ;;  %194 = vmatpush.msra.mxu3 %v1050_v11  ;;  %v811_v56 = vld [vmem:[%s1295_s0 + $0x20] sm:$0xff] }
   0xf   :  { %83 = vmatpush.msra.mxu0 %v1006_v6  ;;  %326 = vmatpush.msra.mxu1 %v1006_v6 }
  0x10   :  { %v58_v8 = vld [vmem:[#allocation2] sm:$0xff]  ;;  %116 = vmatpush.msra.mxu2 %v1058_v12  ;;  %195 = vmatpush.msra.mxu3 %v1058_v12 }
  0x11   :  { %84 = vmatpush.msra.mxu0 %v1013_v7  ;;  %327 = vmatpush.msra.mxu1 %v1013_v7 }
  0x12   :  { %800 = vmatmul.msk.f32.vlgmr.msra.gmra.mxu0 %vm65_vm3, %v58_v8  ;;  %117 = vmatpush.msra.mxu2 %v1066_v13 }
  0x13   :  { %239 = vmatpush.msrb.mxu0 %v976_v1  ;;  %437 = vmatpush.msrb.mxu1 %v1035_v9 }
  0x14   :  { %196 = vmatpush.msra.mxu3 %v1066_v13  ;;  %118 = vmatpush.msra.mxu2 %v1071_v14 }
  0x15   :  { %240 = vmatpush.msrb.mxu0 %v981_v2  ;;  %438 = vmatpush.msrb.mxu1 %v1042_v10 }
  0x16   :  { %197 = vmatpush.msra.mxu3 %v1071_v14  ;;  %119 = vmatpush.msra.mxu2 %v1079_v15 }
  0x17   :  { %241 = vmatpush.msrb.mxu0 %v988_v3  ;;  %439 = vmatpush.msrb.mxu1 %v1050_v11 }
  0x18   :  { %198 = vmatpush.msra.mxu3 %v1079_v15  ;;  %120 = vmatpush.msra.mxu2 %v1087_v16 }
  0x19   :  { %242 = vmatpush.msrb.mxu0 %v999_v5  ;;  %440 = vmatpush.msrb.mxu1 %v1058_v12 }
  0x1a   :  { %199 = vmatpush.msra.mxu3 %v1087_v16  ;;  %160 = vmatpush.msrb.mxu2 %v976_v1 }
  0x1b   :  { %243 = vmatpush.msrb.mxu0 %v1006_v6  ;;  %441 = vmatpush.msrb.mxu1 %v1066_v13 }
  0x1c   :  { %354 = vmatpush.msrb.mxu3 %v1035_v9  ;;  %161 = vmatpush.msrb.mxu2 %v981_v2 }
  0x1d   :  { %244 = vmatpush.msrb.mxu0 %v1013_v7  ;;  %442 = vmatpush.msrb.mxu1 %v1071_v14 }
  0x1e   :  { %355 = vmatpush.msrb.mxu3 %v1042_v10  ;;  %162 = vmatpush.msrb.mxu2 %v988_v3 }
  0x1f   :  { %405 = vmatpush.msra.mxu0 %v976_v1  ;;  %443 = vmatpush.msrb.mxu1 %v1079_v15 }
  0x20   :  { %356 = vmatpush.msrb.mxu3 %v1050_v11  ;;  %163 = vmatpush.msrb.mxu2 %v999_v5 }
  0x21   :  { %406 = vmatpush.msra.mxu0 %v981_v2  ;;  %444 = vmatpush.msrb.mxu1 %v1087_v16 }
  0x22   :  { %357 = vmatpush.msrb.mxu3 %v1058_v12  ;;  %164 = vmatpush.msrb.mxu2 %v1006_v6 }
  0x23   :  { %407 = vmatpush.msra.mxu0 %v988_v3 }
  0x24   :  { %358 = vmatpush.msrb.mxu3 %v1066_v13  ;;  %165 = vmatpush.msrb.mxu2 %v1013_v7 }
  0x25   :  { %408 = vmatpush.msra.mxu0 %v999_v5 }
  0x26   :  { %359 = vmatpush.msrb.mxu3 %v1071_v14 }
  0x27   :  { %409 = vmatpush.msra.mxu0 %v1006_v6 }
  0x28   :  { %360 = vmatpush.msrb.mxu3 %v1079_v15 }
  0x29   :  { %410 = vmatpush.msra.mxu0 %v1013_v7 }
  0x2a   :  { %361 = vmatpush.msrb.mxu3 %v1087_v16 }
  0x8f   :  { %v86_v18 = vpop.f32.mrf.mxu0 }
  0x90   :  { %v87_v19 = vadd.f32 %v1111_v17, %v86_v18 }
  0x92   :  { %835 = vtanh.f32 %v87_v19 }
  0x98   :  { %v836_v20 = vpop.eup %835 }
  0x99   :  { %91 = vst.msk [vmem:[#allocation3] sm:$0xff] %vm90_vm4, %v836_v20  ;;  %127 = vrot.lane.b32.xlu0 %v836_v20, %s923_s13 }
  0xa0   :  { %v92_v21 = vld [vmem:[#allocation3] sm:$0xff] }
  0xa1   :  { %801 = vmatmul.msk.f32.vlgmr.msra.gmra.mxu2 %vm101_vm5, %v92_v21 }
  0xa2   :  { %271 = vmatpush.msra.mxu2 %v1035_v9 }
  0xa4   :  { %272 = vmatpush.msra.mxu2 %v1042_v10 }
  0xa6   :  { %273 = vmatpush.msra.mxu2 %v1050_v11 }
  0xa8   :  { %274 = vmatpush.msra.mxu2 %v1058_v12 }
  0xaa   :  { %275 = vmatpush.msra.mxu2 %v1066_v13 }
  0xac   :  { %276 = vmatpush.msra.mxu2 %v1071_v14 }
  0xae   :  { %277 = vmatpush.msra.mxu2 %v1079_v15 }
  0xb0   :  { %278 = vmatpush.msra.mxu2 %v1087_v16 }
 0x10b   :  { %v128_v23 = vpop.permute.xlu0 %127 }
 0x10c   :  { %130 = vst.msk [vmem:[#allocation2] sm:$0xff] %vm51_vm0, %v128_v23  ;;  %v721_v23 = vld [vmem:[#allocation5 + $0x78] sm:$0xff] }
 0x10d   :  { %139 = vst.msk [vmem:[#allocation2] sm:$0xff] %vm56_vm2, %v802_v22 }
 0x114   :  { %v140_v24 = vld [vmem:[#allocation2] sm:$0xff] }
 0x115   :  { %803 = vmatmul.msk.f32.vlgmr.msrb.gmra.mxu2 %vm65_vm3, %v140_v24  ;;  %v720_v24 = vld [vmem:[#allocation5 + $0x70] sm:$0xff] }
 0x116   :  { %484 = vmatpush.msrb.mxu2 %v976_v1 }
 0x118   :  { %485 = vmatpush.msrb.mxu2 %v981_v2 }
 0x11a   :  { %486 = vmatpush.msrb.mxu2 %v988_v3 }
 0x11c   :  { %487 = vmatpush.msrb.mxu2 %v999_v5 }
 0x11e   :  { %488 = vmatpush.msrb.mxu2 %v1006_v6 }
 0x120   :  { %489 = vmatpush.msrb.mxu2 %v1013_v7 }
 0x124   :  { %v122_v26 = vpop.f32.mrf.mxu2 }
 0x125   :  { %v123_v27 = vadd.f32 %v1142_v25, %v122_v26  ;;  %v719_v26 = vld [vmem:[#allocation5 + $0x68] sm:$0xff] }
 0x127   :  { %837 = vtanh.f32 %v123_v27 }
 0x12d   :  { %v838_v28 = vpop.eup %837 }
 0x12e   :  { %136 = vst.msk [vmem:[#allocation4] sm:$0xff] %vm90_vm4, %v838_v28  ;;  %132 = vrot.lane.b32.xlu0 %v838_v28, %s924_s17  ;;  %v718_v28 = vld [vmem:[#allocation5 + $0x60] sm:$0xff] }
 0x198   :  { %v167_v29 = vpop.f32.mrf.mxu2 }
 0x199   :  { %v168_v30 = vadd.f32 %v1111_v17, %v167_v29  ;;  %v717_v29 = vld [vmem:[#allocation5 + $0x58] sm:$0xff] }
 0x19b   :  { %839 = vtanh.f32 %v168_v30  ;;  %v716_v30 = vld [vmem:[#allocation5 + $0x50] sm:$0xff] }
 0x1a0   :  { %v133_v31 = vpop.permute.xlu0 %132 }
 0x1a1   :  { %v840_v32 = vpop.eup %839  ;;  %135 = vst.msk [vmem:[#allocation3] sm:$0xff] %vm53_vm1, %v133_v31  ;;  %v715_v31 = vld [vmem:[#allocation5 + $0x48] sm:$0xff] }
 0x1a2   :  { %171 = vst.msk [vmem:[#allocation3] sm:$0xff] %vm90_vm4, %v840_v32  ;;  %206 = vrot.lane.b32.xlu1 %v840_v32, %s923_s13  ;;  %v714_v32 = vld [vmem:[#allocation5 + $0x40] sm:$0xff] }
 0x1a9   :  { %v172_v33 = vld [vmem:[#allocation3] sm:$0xff] }
 0x1aa   :  { %804 = vmatmul.msk.f32.vlgmr.msra.gmra.mxu3 %vm101_vm5, %v172_v33 }
 0x1ab   :  { %516 = vmatpush.msra.mxu3 %v1035_v9 }
 0x1ad   :  { %517 = vmatpush.msra.mxu3 %v1042_v10 }
 0x1af   :  { %518 = vmatpush.msra.mxu3 %v1050_v11 }
 0x1b1   :  { %519 = vmatpush.msra.mxu3 %v1058_v12 }
 0x1b3   :  { %520 = vmatpush.msra.mxu3 %v1066_v13 }
 0x1b5   :  { %521 = vmatpush.msra.mxu3 %v1071_v14 }
 0x1b7   :  { %522 = vmatpush.msra.mxu3 %v1079_v15 }
 0x1b9   :  { %523 = vmatpush.msra.mxu3 %v1087_v16 }
 0x214   :  { %v207_v35 = vpop.permute.xlu1 %206 }
 0x215   :  { %209 = vst.msk [vmem:[#allocation2] sm:$0xff] %vm51_vm0, %v207_v35 }
 0x216   :  { %218 = vst.msk [vmem:[#allocation2] sm:$0xff] %vm56_vm2, %v805_v34 }
 0x21d   :  { %v219_v36 = vld [vmem:[#allocation2] sm:$0xff] }
 0x21e   :  { %806 = vmatmul.msk.f32.vlgmr.msrb.gmra.mxu0 %vm65_vm3, %v219_v36  ;;  %v713_v36 = vld [vmem:[#allocation5 + $0x38] sm:$0xff] }
 0x21f   :  { %563 = vmatpush.msrb.mxu0 %v976_v1 }
 0x221   :  { %564 = vmatpush.msrb.mxu0 %v981_v2 }
 0x223   :  { %565 = vmatpush.msrb.mxu0 %v988_v3 }
 0x225   :  { %566 = vmatpush.msrb.mxu0 %v999_v5 }
 0x227   :  { %567 = vmatpush.msrb.mxu0 %v1006_v6 }
 0x229   :  { %568 = vmatpush.msrb.mxu0 %v1013_v7 }
 0x22d   :  { %v201_v37 = vpop.f32.mrf.mxu3 }
 0x22e   :  { %v202_v38 = vadd.f32 %v1142_v25, %v201_v37  ;;  %v712_v37 = vld [vmem:[#allocation5 + $0x30] sm:$0xff] }
 0x230   :  { %841 = vtanh.f32 %v202_v38  ;;  %v711_v38 = vld [vmem:[#allocation5 + $0x28] sm:$0xff] }
 0x236   :  { %v842_v39 = vpop.eup %841 }
 0x237   :  { %211 = vrot.lane.b32.xlu1 %v842_v39, %s924_s17  ;;  %v710_v39 = vld [vmem:[#allocation5 + $0x20] sm:$0xff] }
 0x29b   :  { %v246_v40 = vpop.f32.mrf.mxu0 }
 0x29c   :  { %v247_v41 = vadd.f32 %v1111_v17, %v246_v40  ;;  %v709_v40 = vld [vmem:[#allocation5 + $0x18] sm:$0xff] }
 0x29e   :  { %843 = vtanh.f32 %v247_v41  ;;  %v708_v41 = vld [vmem:[#allocation5 + $0x10] sm:$0xff] }
 0x2a4   :  { %v844_v42 = vpop.eup %843 }
 0x2a5   :  { %285 = vrot.lane.b32.xlu2 %v844_v42, %s923_s13 }
 0x2a9   :  { %v212_v43 = vpop.permute.xlu1 %211 }
 0x2aa   :  { %214 = vst.msk [vmem:[#allocation3] sm:$0xff] %vm53_vm1, %v212_v43 }
 0x2ab   :  { %215 = vst.msk [vmem:[#allocation4] sm:$0xff] %vm53_vm1, %v212_v43  ;;  %v706_v43 = vld [vmem:[#allocation5] sm:$0xff] }
 0x2ac   :  { %250 = vst.msk [vmem:[#allocation3] sm:$0xff] %vm90_vm4, %v844_v42  ;;  %v707_v42 = vld [vmem:[#allocation5 + $0x8] sm:$0xff] }
 0x2b3   :  { %v251_v44 = vld [vmem:[#allocation3] sm:$0xff] }
 0x2b4   :  { %807 = vmatmul.msk.f32.vlgmr.msra.gmra.mxu2 %vm101_vm5, %v251_v44  ;;  %v820_v44 = vld [vmem:[%s1295_s0 + $0x38] sm:$0xff] }
 0x2b5   :  { %595 = vmatpush.msra.mxu2 %v1035_v9 }
 0x2b7   :  { %596 = vmatpush.msra.mxu2 %v1042_v10 }
 0x2b9   :  { %597 = vmatpush.msra.mxu2 %v1050_v11 }
 0x2bb   :  { %598 = vmatpush.msra.mxu2 %v1058_v12 }
 0x2bd   :  { %599 = vmatpush.msra.mxu2 %v1066_v13 }
 0x2bf   :  { %600 = vmatpush.msra.mxu2 %v1071_v14 }
 0x2c1   :  { %601 = vmatpush.msra.mxu2 %v1079_v15 }
 0x2c3   :  { %602 = vmatpush.msra.mxu2 %v1087_v16 }
 0x2ff   :  { %v286_v46 = vpop.permute.xlu2 %285 }
 0x300   :  { %288 = vst.msk [vmem:[#allocation2] sm:$0xff] %vm51_vm0, %v286_v46 }
 0x301   :  { %301 = vst.msk [vmem:[#allocation2] sm:$0xff] %vm56_vm2, %v808_v45 }
 0x308   :  { %v302_v47 = vld [vmem:[#allocation2] sm:$0xff] }
 0x309   :  { %809 = vmatmul.msk.f32.vlgmr.msra.gmra.mxu1 %vm65_vm3, %v302_v47 }
 0x30a   :  { %645 = vmatpush.msra.mxu1 %v976_v1 }
 0x30c   :  { %646 = vmatpush.msra.mxu1 %v981_v2 }
 0x30e   :  { %647 = vmatpush.msra.mxu1 %v988_v3  ;;  %v814_v3 = vld [vmem:[%s1295_s0 + $0x28] sm:$0xff] }
 0x310   :  { %648 = vmatpush.msra.mxu1 %v999_v5 }
 0x312   :  { %649 = vmatpush.msra.mxu1 %v1006_v6 }
 0x314   :  { %650 = vmatpush.msra.mxu1 %v1013_v7 }
 0x337   :  { %v280_v48 = vpop.f32.mrf.mxu2 }
 0x338   :  { %v281_v49 = vadd.f32 %v1142_v25, %v280_v48 }
 0x33a   :  { %845 = vtanh.f32 %v281_v49 }
 0x340   :  { %v1201_v50 = vpop.eup %845 }
 0x341   :  { %290 = vrot.lane.b32.xlu2 %v1201_v50, %s924_s17 }
 0x386   :  { %v329_v51 = vpop.f32.mrf.mxu1 }
 0x387   :  { %v330_v52 = vadd.f32 %v1111_v17, %v329_v51 }
 0x389   :  { %847 = vtanh.f32 %v330_v52 }
 0x38f   :  { %v848_v53 = vpop.eup %847 }
 0x390   :  { %368 = vrot.lane.b32.xlu0 %v848_v53, %s923_s13 }
 0x39b   :  { %v291_v54 = vpop.permute.xlu2 %290 }
 0x39c   :  { %293 = vst.msk [vmem:[#allocation3] sm:$0xff] %vm53_vm1, %v291_v54 }
 0x39d   :  { %333 = vst.msk [vmem:[#allocation3] sm:$0xff] %vm90_vm4, %v848_v53 }
 0x3a4   :  { %v334_v55 = vld [vmem:[#allocation3] sm:$0xff] }
 0x3a5   :  { %810 = vmatmul.msk.f32.vlgmr.msrb.gmra.mxu3 %vm101_vm5, %v334_v55 }
 0x3a6   :  { %742 = vmatpush.msrb.mxu3 %v721_v23 }
 0x3a8   :  { %743 = vmatpush.msrb.mxu3 %v720_v24 }
 0x3aa   :  { %744 = vmatpush.msrb.mxu3 %v719_v26 }
 0x3ac   :  { %745 = vmatpush.msrb.mxu3 %v718_v28 }
 0x3ae   :  { %746 = vmatpush.msrb.mxu3 %v717_v29 }
 0x3b0   :  { %747 = vmatpush.msrb.mxu3 %v716_v30 }
 0x3b2   :  { %748 = vmatpush.msrb.mxu3 %v715_v31 }
 0x3b4   :  { %749 = vmatpush.msrb.mxu3 %v714_v32 }
 0x3b6   :  { %750 = vmatpush.msrb.mxu3 %v713_v36 }
 0x3b8   :  { %751 = vmatpush.msrb.mxu3 %v712_v37 }
 0x3ba   :  { %752 = vmatpush.msrb.mxu3 %v711_v38 }
 0x3bc   :  { %753 = vmatpush.msrb.mxu3 %v710_v39 }
 0x3be   :  { %754 = vmatpush.msrb.mxu3 %v709_v40 }
 0x3c0   :  { %755 = vmatpush.msrb.mxu3 %v708_v41 }
 0x3c2   :  { %756 = vmatpush.msrb.mxu3 %v707_v42 }
 0x3c4   :  { %757 = vmatpush.msrb.mxu3 %v706_v43 }
 0x402   :  { %v369_v57 = vpop.permute.xlu0 %368 }
 0x403   :  { %371 = vst.msk [vmem:[#allocation2] sm:$0xff] %vm51_vm0, %v369_v57 }
 0x404   :  { %384 = vst.msk [vmem:[#allocation2] sm:$0xff] %vm56_vm2, %v811_v56 }
 0x40b   :  { %v385_v58 = vld [vmem:[#allocation2] sm:$0xff] }
 0x40c   :  { %812 = vmatmul.msk.f32.vlgmr.msra.gmra.mxu0 %vm65_vm3, %v385_v58 }
 0x40d   :  { %677 = vmatpush.msra.mxu0 %v1035_v9 }
 0x40f   :  { %678 = vmatpush.msra.mxu0 %v1042_v10 }
 0x411   :  { %679 = vmatpush.msra.mxu0 %v1050_v11 }
 0x413   :  { %680 = vmatpush.msra.mxu0 %v1058_v12 }
 0x415   :  { %681 = vmatpush.msra.mxu0 %v1066_v13 }
 0x417   :  { %682 = vmatpush.msra.mxu0 %v1071_v14  ;;  %v817_v14 = vld [vmem:[%s1295_s0 + $0x30] sm:$0xff] }
 0x419   :  { %683 = vmatpush.msra.mxu0 %v1079_v15 }
 0x41b   :  { %684 = vmatpush.msra.mxu0 %v1087_v16 }
 0x428   :  { %v363_v59 = vpop.f32.mrf.mxu3 }
 0x429   :  { %v364_v60 = vadd.f32 %v1142_v25, %v363_v59  ;;  %v737_v59 = vld [vmem:[#allocation5 + $0xf8] sm:$0xff] }
 0x42b   :  { %849 = vtanh.f32 %v364_v60  ;;  %v735_v60 = vld [vmem:[#allocation5 + $0xe8] sm:$0xff] }
 0x431   :  { %v1225_v61 = vpop.eup %849 }
 0x432   :  { %373 = vrot.lane.b32.xlu1 %v1225_v61, %s924_s17 }
 0x489   :  { %v412_v62 = vpop.f32.mrf.mxu0 }
 0x48a   :  { %v413_v63 = vadd.f32 %v1111_v17, %v412_v62  ;;  %v733_v62 = vld [vmem:[#allocation5 + $0xd8] sm:$0xff] }
 0x48c   :  { %851 = vtanh.f32 %v413_v63  ;;  %v732_v63 = vld [vmem:[#allocation5 + $0xd0] sm:$0xff] }
 0x492   :  { %v852_v0 = vpop.eup %851 }
 0x493   :  { %451 = vrot.lane.b32.xlu2 %v852_v0, %s923_s13 }
 0x4a4   :  { %v374_v1 = vpop.permute.xlu1 %373 }
 0x4a5   :  { %376 = vst.msk [vmem:[#allocation3] sm:$0xff] %vm53_vm1, %v374_v1  ;;  %v730_v1 = vld [vmem:[#allocation5 + $0xc0] sm:$0xff] }
 0x4a6   :  { %416 = vst.msk [vmem:[#allocation3] sm:$0xff] %vm90_vm4, %v852_v0  ;;  %v731_v0 = vld [vmem:[#allocation5 + $0xc8] sm:$0xff] }
 0x4ad   :  { %v417_v2 = vld [vmem:[#allocation3] sm:$0xff] }
 0x4ae   :  { %813 = vmatmul.msk.f32.vlgmr.msrb.gmra.mxu1 %vm101_vm5, %v417_v2  ;;  %v729_v2 = vld [vmem:[#allocation5 + $0xb8] sm:$0xff] }
 0x4af   :  { %762 = vmatpush.msrb.mxu1 %v737_v59 }
 0x4ed   :  { %v452_v4 = vpop.permute.xlu2 %451 }
 0x4ee   :  { %454 = vst.msk [vmem:[#allocation2] sm:$0xff] %vm51_vm0, %v452_v4  ;;  %v727_v4 = vld [vmem:[#allocation5 + $0xa8] sm:$0xff] }
 0x4ef   :  { %463 = vst.msk [vmem:[#allocation2] sm:$0xff] %vm56_vm2, %v814_v3  ;;  %v728_v3 = vld [vmem:[#allocation5 + $0xb0] sm:$0xff] }
 0x4f6   :  { %v464_v5 = vld [vmem:[#allocation2] sm:$0xff] }
 0x4f7   :  { %815 = vmatmul.msk.f32.vlgmr.msrb.gmra.mxu2 %vm65_vm3, %v464_v5  ;;  %v726_v5 = vld [vmem:[#allocation5 + $0xa0] sm:$0xff] }
 0x52b   :  { %v446_v6 = vpop.f32.mrf.mxu1 }
 0x52c   :  { %v447_v7 = vadd.f32 %v1142_v25, %v446_v6 }
 0x52e   :  { %853 = vtanh.f32 %v447_v7 }
 0x534   :  { %v854_v8 = vpop.eup %853 }
 0x535   :  { %460 = vst.msk [vmem:[#allocation4 + $0x8] sm:$0xff] %vm90_vm4, %v854_v8  ;;  %456 = vrot.lane.b32.xlu0 %v854_v8, %s924_s17 }
 0x57a   :  { %v491_v9 = vpop.f32.mrf.mxu2 }
 0x57b   :  { %v492_v10 = vadd.f32 %v1111_v17, %v491_v9  ;;  %v725_v9 = vld [vmem:[#allocation5 + $0x98] sm:$0xff] }
 0x57d   :  { %855 = vtanh.f32 %v492_v10  ;;  %v724_v10 = vld [vmem:[#allocation5 + $0x90] sm:$0xff] }
 0x583   :  { %v856_v11 = vpop.eup %855 }
 0x584   :  { %530 = vrot.lane.b32.xlu1 %v856_v11, %s923_s13 }
 0x5a7   :  { %v457_v12 = vpop.permute.xlu0 %456 }
 0x5a8   :  { %459 = vst.msk [vmem:[#allocation3] sm:$0xff] %vm53_vm1, %v457_v12  ;;  %v722_v12 = vld [vmem:[#allocation5 + $0x80] sm:$0xff] }
 0x5a9   :  { %495 = vst.msk [vmem:[#allocation3] sm:$0xff] %vm90_vm4, %v856_v11  ;;  %v723_v11 = vld [vmem:[#allocation5 + $0x88] sm:$0xff] }
 0x5b0   :  { %v496_v13 = vld [vmem:[#allocation3] sm:$0xff] }
 0x5b1   :  { %816 = vmatmul.msk.f32.vlgmr.msra.gmra.mxu3 %vm101_vm5, %v496_v13 }
 0x5f6   :  { %v531_v15 = vpop.permute.xlu1 %530 }
 0x5f7   :  { %533 = vst.msk [vmem:[#allocation2] sm:$0xff] %vm51_vm0, %v531_v15  ;;  %v834_v15 = vld [vmem:[%s1301_s6] ss:$0 sm:$0xff] }
 0x5f8   :  { %542 = vst.msk [vmem:[#allocation2] sm:$0xff] %vm56_vm2, %v817_v14 }
 0x5ff   :  { %v543_v16 = vld [vmem:[#allocation2] sm:$0xff] }
 0x600   :  { %818 = vmatmul.msk.f32.vlgmr.msrb.gmra.mxu0 %vm65_vm3, %v543_v16 }
 0x634   :  { %v525_v18 = vpop.f32.mrf.mxu3 }
 0x635   :  { %v526_v19 = vadd.f32 %v1142_v25, %v525_v18 }
 0x637   :  { %857 = vtanh.f32 %v526_v19 }
 0x63d   :  { %v858_v20 = vpop.eup %857 }
 0x63e   :  { %535 = vrot.lane.b32.xlu2 %v858_v20, %s924_s17 }
 0x646   :  { %294 = vrot.lane.b32.xlu2 %v1201_v50, %s925_s26 }
 0x67d   :  { %v570_v21 = vpop.f32.mrf.mxu0 }
 0x67e   :  { %v571_v22 = vadd.f32 %v1111_v17, %v570_v21 }
 0x680   :  { %859 = vtanh.f32 %v571_v22 }
 0x686   :  { %v860_v27 = vpop.eup %859 }
 0x687   :  { %609 = vrot.lane.b32.xlu0 %v860_v27, %s923_s13 }
 0x68f   :  { %377 = vrot.lane.b32.xlu0 %v1225_v61, %s926_s27  ;;  %v734_v61 = vld [vmem:[#allocation5 + $0xe0] sm:$0xff] }
 0x698   :  { %v536_v33 = vpop.permute.xlu2 %535 }
 0x699   :  { %538 = vst.msk [vmem:[#allocation3] sm:$0xff] %vm53_vm1, %v536_v33 }
 0x69a   :  { %539 = vst.msk [vmem:[#allocation4 + $0x8] sm:$0xff] %vm53_vm1, %v536_v33 }
 0x69b   :  { %574 = vst.msk [vmem:[#allocation3] sm:$0xff] %vm90_vm4, %v860_v27 }
 0x6a0   :  { %v295_v34 = vpop.permute.xlu2 %294 }
 0x6a1   :  { %298 = vst.msk [vmem:[#allocation4] sm:$0xff] %vm297_vm6, %v295_v34 }
 0x6a2   :  { %v575_v35 = vld [vmem:[#allocation3] sm:$0xff] }
 0x6a3   :  { %819 = vmatmul.msk.f32.vlgmr.msra.gmra.mxu2 %vm101_vm5, %v575_v35 }
 0x6f9   :  { %v610_v45 = vpop.permute.xlu0 %609 }
 0x6fa   :  { %612 = vst.msk [vmem:[#allocation2] sm:$0xff] %vm51_vm0, %v610_v45 }
 0x6fb   :  { %624 = vst.msk [vmem:[#allocation2] sm:$0xff] %vm56_vm2, %v820_v44 }
 0x701   :  { %v378_v46 = vpop.permute.xlu0 %377 }
 0x702   :  { %381 = vst.msk [vmem:[#allocation4] sm:$0xff] %vm380_vm7, %v378_v46  ;;  %v625_v47 = vld [vmem:[#allocation2] sm:$0xff] }
 0x703   :  { %821 = vmatmul.msk.f32.vlgmr.msra.gmra.mxu1 %vm65_vm3, %v625_v47 }
 0x709   :  { %v704_v48 = vld [vmem:[#allocation4] sm:$0xff] }
 0x70a   :  { %758 = vmatmul.f32.vlgmr.msrb.gmra.mxu3 %v704_v48 }
 0x726   :  { %v604_v49 = vpop.f32.mrf.mxu2 }
 0x727   :  { %v605_v50 = vadd.f32 %v1142_v25, %v604_v49 }
 0x729   :  { %861 = vtanh.f32 %v605_v50 }
 0x72f   :  { %v862_v51 = vpop.eup %861 }
 0x730   :  { %614 = vrot.lane.b32.xlu1 %v862_v51, %s924_s17 }
 0x738   :  { %618 = vrot.lane.b32.xlu1 %v862_v51, %s925_s26 }
 0x780   :  { %v652_v52 = vpop.f32.mrf.mxu1 }
 0x781   :  { %v653_v53 = vadd.f32 %v1111_v17, %v652_v52  ;;  %v736_v17 = vld [vmem:[#allocation5 + $0xf0] sm:$0xff] }
 0x782   :  { %763 = vmatpush.msrb.mxu1 %v736_v17 }
 0x783   :  { %863 = vtanh.f32 %v653_v53 }
 0x784   :  { %764 = vmatpush.msrb.mxu1 %v735_v60 }
 0x786   :  { %765 = vmatpush.msrb.mxu1 %v734_v61 }
 0x788   :  { %766 = vmatpush.msrb.mxu1 %v733_v62 }
 0x789   :  { %v864_v54 = vpop.eup %863 }
 0x78a   :  { %691 = vrot.lane.b32.xlu0 %v864_v54, %s923_s13  ;;  %767 = vmatpush.msrb.mxu1 %v732_v63 }
 0x78c   :  { %768 = vmatpush.msrb.mxu1 %v731_v0 }
 0x78d   :  { %v759_v16 = vpop.f32.mrf.mxu3 }
 0x78e   :  { %769 = vmatpush.msrb.mxu1 %v730_v1  ;;  %v760_v18 = vadd.f32 %v834_v15, %v759_v16 }
 0x790   :  { %770 = vmatpush.msrb.mxu1 %v729_v2 }
 0x792   :  { %771 = vmatpush.msrb.mxu1 %v728_v3 }
 0x794   :  { %772 = vmatpush.msrb.mxu1 %v727_v4 }
 0x796   :  { %773 = vmatpush.msrb.mxu1 %v726_v5 }
 0x798   :  { %774 = vmatpush.msrb.mxu1 %v725_v9 }
 0x79a   :  { %775 = vmatpush.msrb.mxu1 %v724_v10 }
 0x79c   :  { %776 = vmatpush.msrb.mxu1 %v723_v11 }
 0x79e   :  { %777 = vmatpush.msrb.mxu1 %v722_v12 }
 0x7a2   :  { %v615_v55 = vpop.permute.xlu1 %614 }
 0x7a3   :  { %617 = vst.msk [vmem:[#allocation3] sm:$0xff] %vm53_vm1, %v615_v55 }
 0x7a4   :  { %656 = vst.msk [vmem:[#allocation3] sm:$0xff] %vm90_vm4, %v864_v54 }
 0x7aa   :  { %v619_v56 = vpop.permute.xlu1 %618 }
 0x7ab   :  { %621 = vst.msk [vmem:[#allocation4 + $0x8] sm:$0xff] %vm297_vm6, %v619_v56  ;;  %v657_v57 = vld [vmem:[#allocation3] sm:$0xff] }
 0x7ac   :  { %822 = vmatmul.msk.f32.vlgmr.msra.gmra.mxu0 %vm101_vm5, %v657_v57 }
 0x7fc   :  { %v692_v58 = vpop.permute.xlu0 %691 }
 0x7fd   :  { %694 = vst.msk [vmem:[#allocation2] sm:$0xff] %vm51_vm0, %v692_v58 }
 0x829   :  { %v686_v6 = vpop.f32.mrf.mxu0 }
 0x82a   :  { %v687_v7 = vadd.f32 %v1142_v25, %v686_v6 }
 0x82c   :  { %865 = vtanh.f32 %v687_v7 }
 0x832   :  { %v866_v8 = vpop.eup %865 }
 0x833   :  { %696 = vrot.lane.b32.xlu1 %v866_v8, %s924_s17  ;;  %700 = vrot.lane.b32.xlu2 %v866_v8, %s926_s27 }
 0x88d   :  { %v701_v13 = vpop.permute.xlu2 %700 }
 0x88e   :  { %703 = vst.msk [vmem:[#allocation4 + $0x8] sm:$0xff] %vm380_vm7, %v701_v13 }
 0x895   :  { %v705_v14 = vld [vmem:[#allocation4 + $0x8] sm:$0xff] }
 0x896   :  { %778 = vmatmul.f32.vlgmr.msrb.gmra.mxu1 %v705_v14 }
 0x8a5   :  { %v697_v25 = vpop.permute.xlu1 %696 }
 0x8a6   :  { %699 = vst.msk [vmem:[#allocation3] sm:$0xff] %vm53_vm1, %v697_v25 }
 0x913   :  { %v779_v19 = vpop.f32.mrf.mxu1 }
 0x914   :  { %v780_v20 = vadd.f32 %v779_v19, %v760_v18 }
 0x916   :  { %782 = vst [vmem:[#allocation8] sm:$0xff] %v780_v20 }
 0x917   :  { %793 = dma.vmem_to_hbm [thread:$0]  %s789_s9, 128, %s791_s11, [#allocation7]  }
 0x918   :  { %917 = dma.done.wait [#allocation7], 128  }
 0x919   :  { %918 = vsyncadd [#allocation7], 4294967168 }
 0x91a   :  { %798 = vsyncpa [#allocation6], 1 }
 0x91b   :  { %799 = vsyncpa [#allocation7], 1 }

</bundles_post_ra>
